<compile_context>
chip_gen: v7x
topology: tpu7x:2x2x1
jax: 0.10.0
libtpu: 0.0.40
codegen_flags: <defaults>
</compile_context>

<pallas_src>
import math
from functools import partial

import jax
import jax.numpy as jnp
from jax.experimental import pallas as pl
from jax.experimental.pallas import tpu as pltpu


def _round_up(n, m):
    return ((n + m - 1) // m) * m


def _mlp_policy_kernel(x_ref, w1_ref, b1_ref, w2_ref, b2_ref, w3_ref, b3_ref,
                       mean_ref):
    # Matmul-operand dtype (bf16 on the fast MXU path, f32 otherwise).
    cdt = w1_ref.dtype
    x = x_ref[...].astype(cdt)                                        # (TM, D_in)
    # All accumulation, bias adds and tanh are in f32 (v5e-safe).
    h1 = jnp.tanh(
        jnp.dot(x, w1_ref[...], preferred_element_type=jnp.float32) + b1_ref[...]
    )                                                                 # (TM, 128) f32
    h2 = jnp.tanh(
        jnp.dot(h1.astype(cdt), w2_ref[...],
                preferred_element_type=jnp.float32) + b2_ref[...]
    )                                                                 # (TM, 64) f32
    mean = (
        jnp.dot(h2.astype(cdt), w3_ref[...],
                preferred_element_type=jnp.float32) + b3_ref[...]
    )                                                                 # (TM, D_out) f32
    mean_ref[...] = mean.astype(mean_ref.dtype)


def mlp_policy_forward(x, params, *, block_m=512, use_bf16_matmul=True):
    """Fused MLP_Policy forward. Returns (mean, std)."""
    w1, b1, w2, b2, w3, b3, log_std = params
    batch, d_in = x.shape
    out_dim = w3.shape[1]

    matmul_dtype = jnp.bfloat16 if use_bf16_matmul else jnp.float32
    w1c = w1.astype(matmul_dtype)
    w2c = w2.astype(matmul_dtype)
    w3c = w3.astype(matmul_dtype)

    # Batch tile: multiple of 8 sublanes, capped so tiny batches stay one tile.
    tm = min(block_m, _round_up(batch, 8))
    padded = _round_up(batch, tm)
    if padded != batch:
        x = jnp.pad(x, ((0, padded - batch), (0, 0)))
    grid = (padded // tm,)

    const = lambda i: (0, 0)   # weights/biases: one resident block for all tiles

    flops = 2 * padded * (d_in * 128 + 128 * 64 + 64 * out_dim)
    bytes_accessed = (
        padded * d_in * 4                                    # x read
        + sum(int(a.size) * a.dtype.itemsize
              for a in (w1c, w2c, w3c, b1, b2, b3))          # params read
        + padded * out_dim * 4                               # mean write
    )

    mean = pl.pallas_call(
        _mlp_policy_kernel,
        out_shape=jax.ShapeDtypeStruct((padded, out_dim), jnp.float32),
        grid_spec=pltpu.PrefetchScalarGridSpec(
            num_scalar_prefetch=0,
            grid=grid,
            in_specs=[
                pl.BlockSpec((tm, d_in), lambda i: (i, 0)),   # x: tiled over batch
                pl.BlockSpec((d_in, 128), const),             # W1 (resident)
                pl.BlockSpec((1, 128), const),                # b1
                pl.BlockSpec((128, 64), const),               # W2
                pl.BlockSpec((1, 64), const),                 # b2
                pl.BlockSpec((64, out_dim), const),           # W3
                pl.BlockSpec((1, out_dim), const),            # b3
            ],
            out_specs=pl.BlockSpec((tm, out_dim), lambda i: (i, 0)),
        ),
        compiler_params=pltpu.CompilerParams(
            dimension_semantics=("parallel",),   # shard batch across v7x's 2 TCs
        ),
        cost_estimate=pl.CostEstimate(
            flops=flops,
            transcendentals=padded * (128 + 64),
            bytes_accessed=bytes_accessed,
        ),
    )(x, w1c, b1, w2c, b2, w3c, b3)

    mean = mean[:batch]
    # std = log_std.expand(mean.size()) -- pure replication, done outside the kernel.
    std = jnp.broadcast_to(log_std.reshape(1, out_dim), mean.shape)
    return mean, std


def init_params(key, input_dim, output_dim):
    """Deterministic init mimicking nn.Linear defaults (+ fc3 scaling)."""
    ks = jax.random.split(key, 6)

    def linear_init(kw, kb, fan_in, fan_out):
        bound = 1.0 / math.sqrt(fan_in)
        # stored as (in, out) so the kernel does x @ W
        w = jax.random.uniform(kw, (fan_in, fan_out), jnp.float32, -bound, bound)
        b = jax.random.uniform(kb, (1, fan_out), jnp.float32, -bound, bound)
        return w, b

    w1, b1 = linear_init(ks[0], ks[1], input_dim, 128)
    w2, b2 = linear_init(ks[2], ks[3], 128, 64)
    w3, b3 = linear_init(ks[4], ks[5], 64, output_dim)
    w3 = w3 * 0.1                  # self.fc3.weight.data.mul_(0.1)
    b3 = b3 * 0.0                  # self.fc3.bias.data.mul_(0.0)
    log_std = jnp.zeros((output_dim,), jnp.float32)   # nn.Parameter(zeros)
    return (w1, b1, w2, b2, w3, b3, log_std)


if __name__ == "__main__":
    key = jax.random.PRNGKey(0)
    k_x, k_p = jax.random.split(key)

    input_dim, output_dim, batch = 32, 8, 8
    x = jax.random.normal(k_x, (batch, input_dim), jnp.float32)
    params = init_params(k_p, input_dim, output_dim)
    w1, b1, w2, b2, w3, b3, log_std = params

    # Plain-JAX f32 reference of the PyTorch forward.
    h1 = jnp.tanh(x @ w1 + b1)
    h2 = jnp.tanh(h1 @ w2 + b2)
    mean_ref = h2 @ w3 + b3
    std_ref = jnp.broadcast_to(log_std.reshape(1, -1), mean_ref.shape)

    # 1) Exact f32 path.
    fwd_f32 = jax.jit(partial(mlp_policy_forward, use_bf16_matmul=False))
    mean32, std32 = fwd_f32(x, params)
    jax.block_until_ready((mean32, std32))
    assert mean32.shape == (batch, output_dim) and std32.shape == (batch, output_dim)
    assert jnp.allclose(mean32, mean_ref, atol=1e-5), "f32 mean mismatch"
    assert jnp.allclose(std32, std_ref), "std mismatch"

    # 2) bf16-MXU-operand perf path (f32 accumulation) -- looser tolerance vs f32 ref.
    fwd_bf16 = jax.jit(partial(mlp_policy_forward, use_bf16_matmul=True))
    mean16, std16 = fwd_bf16(x, params)
    jax.block_until_ready((mean16, std16))
    assert jnp.allclose(mean16, mean_ref, atol=5e-2, rtol=5e-2), "bf16 mean mismatch"
    assert jnp.allclose(std16, std_ref), "bf16 std mismatch"

    # 3) Batch not a multiple of the tile: exercises the pad + slice tail handling.
    xb = jax.random.normal(k_x, (37, input_dim), jnp.float32)
    fwd_tail = jax.jit(partial(mlp_policy_forward, use_bf16_matmul=False, block_m=16))
    mb, sb = fwd_tail(xb, params)
    jax.block_until_ready((mb, sb))
    h1b = jnp.tanh(xb @ w1 + b1)
    h2b = jnp.tanh(h1b @ w2 + b2)
    assert mb.shape == (37, output_dim) and sb.shape == (37, output_dim)
    assert jnp.allclose(mb, h2b @ w3 + b3, atol=1e-5), "tail-tile mean mismatch"

    print("KERNEL_OK")
</pallas_src>

<mosaic_0001>
module attributes {stable_mosaic.version = 11 : i64} {
  func.func @_mlp_policy_kernel(%arg0: i32, %arg1: memref<8x32xf32, #tpu.memory_space<vmem>>, %arg2: memref<32x128xf32, #tpu.memory_space<vmem>>, %arg3: memref<1x128xf32, #tpu.memory_space<vmem>>, %arg4: memref<128x64xf32, #tpu.memory_space<vmem>>, %arg5: memref<1x64xf32, #tpu.memory_space<vmem>>, %arg6: memref<64x8xf32, #tpu.memory_space<vmem>>, %arg7: memref<1x8xf32, #tpu.memory_space<vmem>>, %arg8: memref<8x8xf32, #tpu.memory_space<vmem>>) attributes {dimension_semantics = [#tpu.dimension_semantics<parallel>], iteration_bounds = array<i64: 1>, scalar_prefetch = 0 : i64, scratch_operands = 0 : i64, tpu.core_type = #tpu.core_type<tc>, window_params = [{transform_indices = @transform_0, window_bounds = array<i64: 8, 32>}, {pipeline_mode = #tpu.pipeline_mode<synchronous>, transform_indices = @transform_1, window_bounds = array<i64: 32, 128>}, {pipeline_mode = #tpu.pipeline_mode<synchronous>, transform_indices = @transform_2, window_bounds = array<i64: 1, 128>}, {pipeline_mode = #tpu.pipeline_mode<synchronous>, transform_indices = @transform_3, window_bounds = array<i64: 128, 64>}, {pipeline_mode = #tpu.pipeline_mode<synchronous>, transform_indices = @transform_4, window_bounds = array<i64: 1, 64>}, {pipeline_mode = #tpu.pipeline_mode<synchronous>, transform_indices = @transform_5, window_bounds = array<i64: 64, 8>}, {pipeline_mode = #tpu.pipeline_mode<synchronous>, transform_indices = @transform_6, window_bounds = array<i64: 1, 8>}, {transform_indices = @transform_7, window_bounds = array<i64: 8, 8>}]} {
    %c0 = arith.constant 0 : index
    %c0_0 = arith.constant 0 : index
    %0 = vector.load %arg1[%c0, %c0_0] : memref<8x32xf32, #tpu.memory_space<vmem>>, vector<8x32xf32>
    %c0_1 = arith.constant 0 : index
    %c0_2 = arith.constant 0 : index
    %1 = vector.load %arg2[%c0_1, %c0_2] : memref<32x128xf32, #tpu.memory_space<vmem>>, vector<32x128xf32>
    %cst = arith.constant dense<0.000000e+00> : vector<8x128xf32>
    %2 = tpu.matmul %0, %1, %cst {dimension_numbers = #tpu.dot_dimension_numbers<[1], [0], [0], [1], [0, 0, 1, 1], [], []>} : vector<8x32xf32>, vector<32x128xf32>, vector<8x128xf32> -> vector<8x128xf32>
    %c0_3 = arith.constant 0 : index
    %c0_4 = arith.constant 0 : index
    %3 = vector.load %arg3[%c0_3, %c0_4] : memref<1x128xf32, #tpu.memory_space<vmem>>, vector<1x128xf32>
    %4 = vector.broadcast %3 : vector<1x128xf32> to vector<8x128xf32>
    %5 = arith.addf %2, %4 : vector<8x128xf32>
    %6 = math.tanh %5 : vector<8x128xf32>
    %c0_5 = arith.constant 0 : index
    %c0_6 = arith.constant 0 : index
    %7 = vector.load %arg4[%c0_5, %c0_6] : memref<128x64xf32, #tpu.memory_space<vmem>>, vector<128x64xf32>
    %cst_7 = arith.constant dense<0.000000e+00> : vector<8x64xf32>
    %8 = tpu.matmul %6, %7, %cst_7 {dimension_numbers = #tpu.dot_dimension_numbers<[1], [0], [0], [1], [0, 0, 1, 1], [], []>} : vector<8x128xf32>, vector<128x64xf32>, vector<8x64xf32> -> vector<8x64xf32>
    %c0_8 = arith.constant 0 : index
    %c0_9 = arith.constant 0 : index
    %9 = vector.load %arg5[%c0_8, %c0_9] : memref<1x64xf32, #tpu.memory_space<vmem>>, vector<1x64xf32>
    %10 = vector.broadcast %9 : vector<1x64xf32> to vector<8x64xf32>
    %11 = arith.addf %8, %10 : vector<8x64xf32>
    %12 = math.tanh %11 : vector<8x64xf32>
    %c0_10 = arith.constant 0 : index
    %c0_11 = arith.constant 0 : index
    %13 = vector.load %arg6[%c0_10, %c0_11] : memref<64x8xf32, #tpu.memory_space<vmem>>, vector<64x8xf32>
    %cst_12 = arith.constant dense<0.000000e+00> : vector<8x8xf32>
    %14 = tpu.matmul %12, %13, %cst_12 {dimension_numbers = #tpu.dot_dimension_numbers<[1], [0], [0], [1], [0, 0, 1, 1], [], []>} : vector<8x64xf32>, vector<64x8xf32>, vector<8x8xf32> -> vector<8x8xf32>
    %c0_13 = arith.constant 0 : index
    %c0_14 = arith.constant 0 : index
    %15 = vector.load %arg7[%c0_13, %c0_14] : memref<1x8xf32, #tpu.memory_space<vmem>>, vector<1x8xf32>
    %16 = vector.broadcast %15 : vector<1x8xf32> to vector<8x8xf32>
    %17 = arith.addf %14, %16 : vector<8x8xf32>
    %c0_15 = arith.constant 0 : index
    %c0_16 = arith.constant 0 : index
    %18 = vector.load %arg8[%c0_15, %c0_16] : memref<8x8xf32, #tpu.memory_space<vmem>>, vector<8x8xf32>
    tpu.vector_store %arg8[%c0_15, %c0_16], %17 {strides = array<i32>} : memref<8x8xf32, #tpu.memory_space<vmem>>, vector<8x8xf32>,
    return
  }
  func.func @transform_0(%arg0: i32) -> (i32, i32) {
    %c0_i32 = arith.constant 0 : i32
    %c0_i32_0 = arith.constant 0 : i32
    return %arg0, %c0_i32 : i32, i32
  }
  func.func @transform_1(%arg0: i32) -> (i32, i32) {
    %c0_i32 = arith.constant 0 : i32
    %c0_i32_0 = arith.constant 0 : i32
    %c0_i32_1 = arith.constant 0 : i32
    return %c0_i32, %c0_i32_0 : i32, i32
  }
  func.func @transform_2(%arg0: i32) -> (i32, i32) {
    %c0_i32 = arith.constant 0 : i32
    %c0_i32_0 = arith.constant 0 : i32
    %c0_i32_1 = arith.constant 0 : i32
    return %c0_i32, %c0_i32_0 : i32, i32
  }
  func.func @transform_3(%arg0: i32) -> (i32, i32) {
    %c0_i32 = arith.constant 0 : i32
    %c0_i32_0 = arith.constant 0 : i32
    %c0_i32_1 = arith.constant 0 : i32
    return %c0_i32, %c0_i32_0 : i32, i32
  }
  func.func @transform_4(%arg0: i32) -> (i32, i32) {
    %c0_i32 = arith.constant 0 : i32
    %c0_i32_0 = arith.constant 0 : i32
    %c0_i32_1 = arith.constant 0 : i32
    return %c0_i32, %c0_i32_0 : i32, i32
  }
  func.func @transform_5(%arg0: i32) -> (i32, i32) {
    %c0_i32 = arith.constant 0 : i32
    %c0_i32_0 = arith.constant 0 : i32
    %c0_i32_1 = arith.constant 0 : i32
    return %c0_i32, %c0_i32_0 : i32, i32
  }
  func.func @transform_6(%arg0: i32) -> (i32, i32) {
    %c0_i32 = arith.constant 0 : i32
    %c0_i32_0 = arith.constant 0 : i32
    %c0_i32_1 = arith.constant 0 : i32
    return %c0_i32, %c0_i32_0 : i32, i32
  }
  func.func @transform_7(%arg0: i32) -> (i32, i32) {
    %c0_i32 = arith.constant 0 : i32
    %c0_i32_0 = arith.constant 0 : i32
    return %arg0, %c0_i32 : i32, i32
  }
}

</mosaic_0001>

<bundles_post_ra>
// kernel: mlp_policy_forward.1
= control target key start
LH: loop header
LB: loop body
LE: loop exit
PB: predicated region body
PF: predicated region fallthrough
CT: control target
= control target key end

     0   :  { %v488_v3 = vmov 0.0|0.0   ;;  %vm489_vm0 = vmmov 0   ;;  %v490_v6 = vmov 0.0   ;;  %s657_s0 = inlined_call_operand.vmem [shape: f32[8,32], index: 0, kind: input, shape index: {}]   ;;  %s658_s1 = inlined_call_operand.vmem [shape: f32[32,128], index: 1, kind: input, shape index: {}]   ;;  %s659_s2 = inlined_call_operand.vmem [shape: f32[1,128], index: 2, kind: input, shape index: {}]   ;;  %s660_s3 = inlined_call_operand.vmem [shape: f32[128,64], index: 3, kind: input, shape index: {}]   ;;  %s661_s4 = inlined_call_operand.vmem [shape: f32[1,64], index: 4, kind: input, shape index: {}]   ;;  %s662_s5 = inlined_call_operand.vmem [shape: f32[64,8], index: 5, kind: input, shape index: {}]   ;;  %s663_s6 = inlined_call_operand.vmem [shape: f32[1,8], index: 6, kind: input, shape index: {}]   ;;  %s664_s7 = inlined_call_operand.hbm [shape: f32[8,8], index: 7, kind: output, shape index: {}]  }
   0x1   :  { %v28_v0 = vld [vmem:[%s658_s1] sm:$0xff]  ;;  %v29_v1 = vld [vmem:[%s658_s1 + $0x8] sm:$0xff]  ;;  %v30_v2 = vld [vmem:[%s658_s1 + $0x10] sm:$0xff]  ;;  %414 = vmatprep.subr.bf16.mxu0 %v488_v3  ;;  %357 = vmatprep.mubr.msk.f32.mxu0 %vm489_vm0, %v490_v6 }
   0x2   :  { %v415_v4 = vpack.c.bf16 %v29_v1, %v28_v0  ;;  %v31_v5 = vld [vmem:[%s658_s1 + $0x18] sm:$0xff]  ;;  %v114_v7 = vld [vmem:[%s660_s3] sm:$0xff]  ;;  %420 = vmatprep.subr.bf16.mxu1 %v488_v3  ;;  %v115_v8 = vld [vmem:[%s660_s3 + $0x8] sm:$0xff]  ;;  %392 = vmatprep.mubr.msk.f32.mxu1 %vm489_vm0, %v490_v6 }
   0x3   :  { %v116_v9 = vld [vmem:[%s660_s3 + $0x10] sm:$0xff]  ;;  %v117_v10 = vld [vmem:[%s660_s3 + $0x18] sm:$0xff]  ;;  %v418_v11 = vpack.c.bf16 %v31_v5, %v30_v2  ;;  %v421_v12 = vpack.c.bf16 %v115_v8, %v114_v7 }
   0x4   :  { %416 = vmatpush3.bf16.msra.mxu0 %v415_v4  ;;  %v424_v13 = vpack.c.bf16 %v117_v10, %v116_v9 }
   0x5   :  { %417 = vmatprep.subr.bf16.mxu0 %v488_v3  ;;  %422 = vmatpush3.bf16.msra.mxu1 %v421_v12 }
   0x6   :  { %12 = vsyncpa [#allocation3], 0  ;;  %423 = vmatprep.subr.bf16.mxu1 %v488_v3  ;;  %v118_v14 = vld [vmem:[%s660_s3 + $0x20] sm:$0xff]  ;;  %v119_v15 = vld [vmem:[%s660_s3 + $0x28] sm:$0xff]  ;;  %vm39_vm1 = vcmask 261120   ;;  %vm223_vm2 = vcmask 523264  }
   0x7   :  { %v27_v16 = vld [vmem:[%s657_s0] sm:$0xff]  ;;  %v427_v17 = vpack.c.bf16 %v119_v15, %v118_v14  ;;  %v120_v18 = vld [vmem:[%s660_s3 + $0x30] sm:$0xff]  ;;  %v121_v19 = vld [vmem:[%s660_s3 + $0x38] sm:$0xff]  ;;  %vm297_vm3 = vcmask 64512  }
   0x8   :  { %419 = vmatpush3.bf16.msra.mxu0 %v418_v11  ;;  %v430_v20 = vpack.c.bf16 %v121_v19, %v120_v18  ;;  %v122_v21 = vld [vmem:[%s660_s3 + $0x40] sm:$0xff]  ;;  %v123_v22 = vld [vmem:[%s660_s3 + $0x48] sm:$0xff]  ;;  %v124_v24 = vld [vmem:[%s660_s3 + $0x50] sm:$0xff] }
   0x9   :  { %444 = vmatprep.subr.bf16.mxu0 %v488_v3  ;;  %425 = vmatpush3.bf16.msra.mxu1 %v424_v13  ;;  %v433_v23 = vpack.c.bf16 %v123_v22, %v122_v21  ;;  %v125_v25 = vld [vmem:[%s660_s3 + $0x58] sm:$0xff]  ;;  %v126_v27 = vld [vmem:[%s660_s3 + $0x60] sm:$0xff]  ;;  %v127_v28 = vld [vmem:[%s660_s3 + $0x68] sm:$0xff] }
   0xa   :  { %426 = vmatprep.subr.bf16.mxu1 %v488_v3  ;;  %v436_v26 = vpack.c.bf16 %v125_v25, %v124_v24  ;;  %v439_v29 = vpack.c.bf16 %v127_v28, %v126_v27  ;;  %v128_v30 = vld [vmem:[%s660_s3 + $0x70] sm:$0xff]  ;;  %v129_v31 = vld [vmem:[%s660_s3 + $0x78] sm:$0xff]  ;;  %v208_v33 = vld [vmem:[%s662_s5] sm:$0xff] }
   0xb   :  { %358 = vmatmul.mubr.msk.f32.vlgmr.msra.gmra.mrb[0].mxu0 %vm39_vm1, %v27_v16  ;;  %v442_v32 = vpack.c.bf16 %v129_v31, %v128_v30  ;;  %v209_v34 = vld [vmem:[%s662_s5 + $0x8] sm:$0xff]  ;;  %v313_v36 = vld [vmem:[%s659_s2] ss:$0 sm:$0xff]  ;;  %v210_v41 = vld [vmem:[%s662_s5 + $0x10] sm:$0xff] }
   0xc   :  { %411 = vmatprep.mubr.msk.f32.mxu0 %vm489_vm0, %v490_v6  ;;  %v445_v35 = vpack.c.bf16 %v209_v34, %v208_v33  ;;  %v211_v42 = vld [vmem:[%s662_s5 + $0x18] sm:$0xff]  ;;  %v212_v44 = vld [vmem:[%s662_s5 + $0x20] sm:$0xff]  ;;  %v213_v45 = vld [vmem:[%s662_s5 + $0x28] sm:$0xff] }
   0xd   :  { %428 = vmatpush3.bf16.msra.mxu1 %v427_v17  ;;  %v448_v43 = vpack.c.bf16 %v211_v42, %v210_v41  ;;  %v451_v46 = vpack.c.bf16 %v213_v45, %v212_v44  ;;  %v214_v47 = vld [vmem:[%s662_s5 + $0x30] sm:$0xff]  ;;  %v215_v48 = vld [vmem:[%s662_s5 + $0x38] sm:$0xff]  ;;  %v315_v50 = vld [vmem:[%s661_s4] ss:$0 sm:$0xff]  ;;  %s491_s5 = smov [#allocation2]  }
   0xe   :  { %429 = vmatprep.subr.bf16.mxu1 %v488_v3  ;;  %446 = vmatpush3.bf16.msra.mxu0 %v445_v35  ;;  %v454_v49 = vpack.c.bf16 %v215_v48, %v214_v47  ;;  %v316_v55 = vld [vmem:[%s663_s6] ss:$0 sm:$0xff]  ;;  %s305_s13 = sshll.u32 %s491_s5, 4  ;;  %s306_s13 = int_to_ptr.vmem [resolvable:$true] %s305_s13 }
   0xf   :  { %447 = vmatprep.subr.bf16.mxu0 %v488_v3  ;;  %s464_s4 = scalar_lea.vmem %s306_s13, 128  ;;  %p469_p1 = scmp.lt.s32.totalorder %s306_s13, %s306_s13 }
  0x10   :  { %p465_p0 = scmp.ne.s32.totalorder %s306_s13, %s464_s4  ;;  %p470_p2 = scmp.lt.s32.totalorder %s464_s4, %s464_s4 }
  0x11   :  { %431 = vmatpush3.bf16.msra.mxu1 %v430_v20 }
  0x12   :  { %432 = vmatprep.subr.bf16.mxu1 %v488_v3  ;;  %449 = vmatpush3.bf16.msra.mxu0 %v448_v43  ;;  %p471_p3 = por %p470_p2, %p469_p1 }
  0x13   :  { %450 = vmatprep.subr.bf16.mxu0 %v488_v3 }
  0x14   :  { %p472_p4 = pnand %p471_p3, %p465_p0 }
  0x15   :  { %434 = vmatpush3.bf16.msra.mxu1 %v433_v23 }
  0x16   :  { %435 = vmatprep.subr.bf16.mxu1 %v488_v3  ;;  %452 = vmatpush3.bf16.msra.mxu0 %v451_v46 }
  0x17   :  { %453 = vmatprep.subr.bf16.mxu0 %v488_v3 }
  0x19   :  { %437 = vmatpush3.bf16.msra.mxu1 %v436_v26 }
  0x1a   :  { %438 = vmatprep.subr.bf16.mxu1 %v488_v3  ;;  %455 = vmatpush3.bf16.msra.mxu0 %v454_v49 }
  0x1d   :  { %440 = vmatpush3.bf16.msra.mxu1 %v439_v29 }
  0x1e   :  { %441 = vmatprep.subr.bf16.mxu1 %v488_v3 }
  0x21   :  { %443 = vmatpush3.bf16.msra.mxu1 %v442_v32 }
  0xde   :  { %v109_v37 = vpop.f32.mrb[0].mxu0 }
  0xdf   :  { %v110_v38 = vadd.f32 %v313_v36, %v109_v37  ;;  %v359_v39 = vpop.f32.mrb[1].mxu0 }
  0xe1   :  { %460 = vtanh.f32 %v110_v38 }
  0xeb   :  { %v461_v40 = vpop.eup %460 }
  0xec   :  { %393 = vmatmul.mubr.f32.vlgmr.msra.gmra.mrb[0].mxu1 %v461_v40 }
 0x1bf   :  { %v203_v51 = vpop.f32.mrb[0].mxu1 }
 0x1c0   :  { %v204_v52 = vadd.f32 %v315_v50, %v203_v51  ;;  %v394_v53 = vpop.f32.mrb[1].mxu1 }
 0x1c2   :  { %462 = vtanh.f32 %v204_v52 }
 0x1cc   :  { %v463_v54 = vpop.eup %462 }
 0x1cd   :  { %412 = vmatmul.mubr.msk.f32.vlgmr.msra.gmra.mrb[2].mxu0 %vm223_vm2, %v463_v54 }
 0x2a0   :  { %v293_v56 = vpop.f32.mrb[2].mxu0 }
 0x2a1   :  { %v294_v57 = vadd.f32 %v316_v55, %v293_v56  ;;  %v413_v58 = vpop.f32.mrb[3].mxu0 }
 0x2a3   :  { %298 = vst.msk [vmem:[#allocation2] sm:$0xff] %vm297_vm3, %v294_v57 }
 0x2a4   :  { %475 = shalt.err (!%p472_p4)
}
 0x2a5   :  { %s476_s1 = scalar_lea.hbm %s664_s7, 128 }
 0x2a6   :  { %p477_p5 = scmp.ne.s32.totalorder %s664_s7, %s476_s1  ;;  %p480_p6 = scmp.lt.u32.totalorder %s476_s1, %s664_s7 }
 0x2a8   :  { %p482_p7 = pnand %p480_p6, %p477_p5 }
 0x2aa   :  { %485 = shalt.err (!%p482_p7)
}
 0x2ab   :  { %308 = dma.vmem_to_hbm [thread:$0]  %s306_s13, 128, %s664_s7, [#allocation3]  }
 0x2ac   :  { %486 = dma.done.wait [#allocation3], 128  }
 0x2ad   :  { %487 = vsyncadd [#allocation3], 4294967168 }
 0x2ae   :  { %312 = vsyncpa [#allocation3], 1 }

</bundles_post_ra>
